<compile_context>
chip_gen: v6e
topology: v6e:2x2x1
jax: 0.10.0
libtpu: 0.0.40
codegen_flags: <defaults>
</compile_context>

<pallas_src>
import functools

import jax
import jax.numpy as jnp
from jax.experimental import pallas as pl
from jax.experimental.pallas import tpu as pltpu

WIDTH = 256
EPS = 1e-5


def _bn_simple_net_kernel(x_ref, w1_ref, w23_ref, wf_ref, p_ref, out_ref):
    out_dim = out_ref.shape[1]

    def matmul_bf16(h, w):
        # bf16 operands -> native MXU fast path on v5e/v6e/v7x; f32 accumulate.
        return jnp.dot(h.astype(jnp.bfloat16), w,
                       preferred_element_type=jnp.float32)

    def bn_relu(h, layer):
        # BatchNorm1d (training mode): per-feature stats over the batch axis,
        # biased variance, eps=1e-5, affine, then ReLU.  All f32 on the VPU.
        g = p_ref[2 * layer:2 * layer + 1, :]        # (1, width) f32
        be = p_ref[2 * layer + 1:2 * layer + 2, :]   # (1, width) f32
        mean = jnp.mean(h, axis=0, keepdims=True)
        centered = h - mean
        var = jnp.mean(centered * centered, axis=0, keepdims=True)
        return jnp.maximum(centered * jax.lax.rsqrt(var + EPS) * g + be, 0.0)

    # Hidden-layer Linear biases are omitted: they are cancelled exactly by the
    # subsequent training-mode BatchNorm mean subtraction.
    h = bn_relu(matmul_bf16(x_ref[...], w1_ref[...]), 0)
    h = bn_relu(matmul_bf16(h, w23_ref[0]), 1)
    h = bn_relu(matmul_bf16(h, w23_ref[1]), 2)

    bf = p_ref[6:7, :][:, :out_dim]                  # (1, out_dim) f32
    out_ref[...] = (matmul_bf16(h, wf_ref[...]) + bf).astype(out_ref.dtype)


def prepare_params(params):
    """One-time conversion of PyTorch-style params to the packed kernel format.

    Done once (outside the per-call path): bf16 weight casts, w2/w3 stacking,
    and packing of all small per-feature vectors into a single [8, width] f32
    buffer (rows: g1, be1, g2, be2, g3, be3, bf (zero-padded), unused).
    """
    width = params["w1"].shape[1]
    out_dim = params["wf"].shape[1]
    assert out_dim <= width, "packing assumes out_dim <= width"

    w1 = params["w1"].astype(jnp.bfloat16)                       # (inp, width)
    w23 = jnp.stack([params["w2"], params["w3"]]).astype(jnp.bfloat16)
    wf = params["wf"].astype(jnp.bfloat16)                       # (width, out)
    bf_row = jnp.pad(params["bf"], ((0, 0), (0, width - out_dim)))
    packed = jnp.concatenate(
        [params["g1"], params["be1"],
         params["g2"], params["be2"],
         params["g3"], params["be3"],
         bf_row, jnp.zeros((1, width), jnp.float32)], axis=0)    # (8, width)
    # b1/b2/b3 deliberately not included (cancelled by training-mode BN).
    return {"w1": w1, "w23": w23, "wf": wf, "packed": packed}


@jax.jit
def batch_norm_simple_net(x, kparams):
    """x: [B, inp_dim] float32. kparams: dict from prepare_params."""
    B = x.shape[0]
    out_dim = kparams["wf"].shape[1]
    vmem = pl.BlockSpec(memory_space=pltpu.MemorySpace.VMEM)
    # Single invocation (no grid): everything (<1 MiB) is VMEM-resident; at
    # B=8 any batch tiling would only add overhead (and would require
    # two-phase BN statistics).
    return pl.pallas_call(
        _bn_simple_net_kernel,
        out_shape=jax.ShapeDtypeStruct((B, out_dim), jnp.float32),
        in_specs=[vmem] * 5,
        out_specs=vmem,
    )(x, kparams["w1"], kparams["w23"], kparams["wf"], kparams["packed"])


def init_params(key, inp_dim, out_dim, width=WIDTH):
    """PyTorch-style init: Linear weight/bias ~ U(-1/sqrt(fan_in), +), BN gamma=1,
    beta=0. Linear weights stored as [in, out] (pre-transposed)."""
    def linear_init(k, fan_in, fan_out):
        kw, kb = jax.random.split(k)
        bound = 1.0 / jnp.sqrt(fan_in)
        w = jax.random.uniform(kw, (fan_in, fan_out), jnp.float32, -bound, bound)
        b = jax.random.uniform(kb, (1, fan_out), jnp.float32, -bound, bound)
        return w, b

    k1, k2, k3, k4 = jax.random.split(key, 4)
    w1, b1 = linear_init(k1, inp_dim, width)
    w2, b2 = linear_init(k2, width, width)
    w3, b3 = linear_init(k3, width, width)
    wf, bf = linear_init(k4, width, out_dim)

    ones = jnp.ones((1, width), jnp.float32)
    zeros = jnp.zeros((1, width), jnp.float32)
    return {
        "w1": w1, "b1": b1, "g1": ones, "be1": zeros,
        "w2": w2, "b2": b2, "g2": ones, "be2": zeros,
        "w3": w3, "b3": b3, "g3": ones, "be3": zeros,
        "wf": wf, "bf": bf,
    }


def _reference_f32(x, p):
    """Full-precision PyTorch-equivalent forward (hidden biases included)."""
    def bn_relu(h, g, be):
        mean = jnp.mean(h, axis=0, keepdims=True)
        var = jnp.mean((h - mean) ** 2, axis=0, keepdims=True)
        return jnp.maximum((h - mean) / jnp.sqrt(var + EPS) * g + be, 0.0)

    h = bn_relu(x @ p["w1"] + p["b1"], p["g1"], p["be1"])
    h = bn_relu(h @ p["w2"] + p["b2"], p["g2"], p["be2"])
    h = bn_relu(h @ p["w3"] + p["b3"], p["g3"], p["be3"])
    return h @ p["wf"] + p["bf"]


def _reference_kernel_math(x, p):
    """Pure-JAX model of the exact kernel math (bf16 matmuls, hidden biases dropped)."""
    def dot_bf16(h, w):
        return jnp.dot(h.astype(jnp.bfloat16), w.astype(jnp.bfloat16),
                       preferred_element_type=jnp.float32)

    def bn_relu(h, g, be):
        mean = jnp.mean(h, axis=0, keepdims=True)
        c = h - mean
        var = jnp.mean(c * c, axis=0, keepdims=True)
        return jnp.maximum(c * jax.lax.rsqrt(var + EPS) * g + be, 0.0)

    h = bn_relu(dot_bf16(x, p["w1"]), p["g1"], p["be1"])
    h = bn_relu(dot_bf16(h, p["w2"]), p["g2"], p["be2"])
    h = bn_relu(dot_bf16(h, p["w3"]), p["g3"], p["be3"])
    return dot_bf16(h, p["wf"]) + p["bf"]


if __name__ == "__main__":
    key = jax.random.PRNGKey(0)
    k_x, k_p = jax.random.split(key)

    B, INP_DIM, OUT_DIM = 8, 32, 16
    x = jax.random.normal(k_x, (B, INP_DIM), jnp.float32)
    params = init_params(k_p, INP_DIM, OUT_DIM)

    # One-time weight prep (bf16 casts, stacking, packing) outside the call path.
    kparams = jax.tree_util.tree_map(jax.block_until_ready,
                                     prepare_params(params))

    out = jax.block_until_ready(batch_norm_simple_net(x, kparams))
    assert out.shape == (B, OUT_DIM)

    # Tight check against a pure-JAX model of the exact kernel math.
    ref_k = _reference_kernel_math(x, params)
    assert jnp.allclose(out, ref_k, atol=1e-3, rtol=1e-3), (
        float(jnp.max(jnp.abs(out - ref_k))))

    # Loose check against the full-f32 PyTorch-equivalent forward (bf16 MXU
    # operands + dropped-but-cancelled hidden biases account for the slack).
    ref_f32 = _reference_f32(x, params)
    assert jnp.allclose(out, ref_f32, atol=1e-1, rtol=1e-1), (
        float(jnp.max(jnp.abs(out - ref_f32))))

    print("KERNEL_OK")
</pallas_src>

<mosaic_0001>
module attributes {stable_mosaic.version = 11 : i64} {
  func.func @_bn_simple_net_kernel(%arg0: memref<8x32xf32, #tpu.memory_space<vmem>>, %arg1: memref<32x256xbf16, #tpu.memory_space<vmem>>, %arg2: memref<2x256x256xbf16, #tpu.memory_space<vmem>>, %arg3: memref<256x16xbf16, #tpu.memory_space<vmem>>, %arg4: memref<8x256xf32, #tpu.memory_space<vmem>>, %arg5: memref<8x16xf32, #tpu.memory_space<vmem>>) attributes {dimension_semantics = [], scalar_prefetch = 0 : i64, scratch_operands = 0 : i64, tpu.core_type = #tpu.core_type<tc>} {
    %c0 = arith.constant 0 : index
    %c0_0 = arith.constant 0 : index
    %0 = vector.load %arg0[%c0, %c0_0] : memref<8x32xf32, #tpu.memory_space<vmem>>, vector<8x32xf32>
    %c0_1 = arith.constant 0 : index
    %c0_2 = arith.constant 0 : index
    %1 = vector.load %arg1[%c0_1, %c0_2] : memref<32x256xbf16, #tpu.memory_space<vmem>>, vector<32x256xbf16>
    %2 = arith.truncf %0 : vector<8x32xf32> to vector<8x32xbf16>
    %cst = arith.constant dense<0.000000e+00> : vector<8x256xf32>
    %3 = tpu.matmul %2, %1, %cst {dimension_numbers = #tpu.dot_dimension_numbers<[1], [0], [0], [1], [0, 0, 1, 1], [], []>} : vector<8x32xbf16>, vector<32x256xbf16>, vector<8x256xf32> -> vector<8x256xf32>
    %c0_3 = arith.constant 0 : index
    %c0_4 = arith.constant 0 : index
    %4 = vector.load %arg4[%c0_3, %c0_4] : memref<8x256xf32, #tpu.memory_space<vmem>>, vector<1x256xf32>
    %c1 = arith.constant 1 : index
    %c0_5 = arith.constant 0 : index
    %5 = vector.load %arg4[%c1, %c0_5] : memref<8x256xf32, #tpu.memory_space<vmem>>, vector<1x256xf32>
    %cst_6 = arith.constant dense<0.000000e+00> : vector<256xf32>
    %6 = vector.multi_reduction <add>, %3, %cst_6 [0] : vector<8x256xf32> to vector<256xf32>
    %7 = vector.shape_cast %6 : vector<256xf32> to vector<1x256xf32>
    %cst_7 = arith.constant 8.000000e+00 : f32
    %8 = vector.broadcast %cst_7 : f32 to vector<1x256xf32>
    %9 = arith.divf %7, %8 : vector<1x256xf32>
    %10 = vector.broadcast %9 : vector<1x256xf32> to vector<8x256xf32>
    %11 = arith.subf %3, %10 : vector<8x256xf32>
    %12 = arith.mulf %11, %11 : vector<8x256xf32>
    %cst_8 = arith.constant dense<0.000000e+00> : vector<256xf32>
    %13 = vector.multi_reduction <add>, %12, %cst_8 [0] : vector<8x256xf32> to vector<256xf32>
    %14 = vector.shape_cast %13 : vector<256xf32> to vector<1x256xf32>
    %cst_9 = arith.constant 8.000000e+00 : f32
    %15 = vector.broadcast %cst_9 : f32 to vector<1x256xf32>
    %16 = arith.divf %14, %15 : vector<1x256xf32>
    %cst_10 = arith.constant 9.99999974E-6 : f32
    %17 = vector.broadcast %cst_10 : f32 to vector<1x256xf32>
    %18 = arith.addf %16, %17 : vector<1x256xf32>
    %19 = math.rsqrt %18 : vector<1x256xf32>
    %20 = vector.broadcast %19 : vector<1x256xf32> to vector<8x256xf32>
    %21 = arith.mulf %11, %20 : vector<8x256xf32>
    %22 = vector.broadcast %4 : vector<1x256xf32> to vector<8x256xf32>
    %23 = arith.mulf %21, %22 : vector<8x256xf32>
    %24 = vector.broadcast %5 : vector<1x256xf32> to vector<8x256xf32>
    %25 = arith.addf %23, %24 : vector<8x256xf32>
    %cst_11 = arith.constant 0.000000e+00 : f32
    %26 = vector.broadcast %cst_11 : f32 to vector<8x256xf32>
    %27 = arith.maximumf %25, %26 : vector<8x256xf32>
    %c0_12 = arith.constant 0 : index
    %c0_13 = arith.constant 0 : index
    %c0_14 = arith.constant 0 : index
    %28 = vector.load %arg2[%c0_12, %c0_13, %c0_14] : memref<2x256x256xbf16, #tpu.memory_space<vmem>>, vector<1x256x256xbf16>
    %29 = vector.shape_cast %28 : vector<1x256x256xbf16> to vector<256x256xbf16>
    %30 = arith.truncf %27 : vector<8x256xf32> to vector<8x256xbf16>
    %cst_15 = arith.constant dense<0.000000e+00> : vector<8x256xf32>
    %31 = tpu.matmul %30, %29, %cst_15 {dimension_numbers = #tpu.dot_dimension_numbers<[1], [0], [0], [1], [0, 0, 1, 1], [], []>} : vector<8x256xbf16>, vector<256x256xbf16>, vector<8x256xf32> -> vector<8x256xf32>
    %c2 = arith.constant 2 : index
    %c0_16 = arith.constant 0 : index
    %32 = vector.load %arg4[%c2, %c0_16] : memref<8x256xf32, #tpu.memory_space<vmem>>, vector<1x256xf32>
    %c3 = arith.constant 3 : index
    %c0_17 = arith.constant 0 : index
    %33 = vector.load %arg4[%c3, %c0_17] : memref<8x256xf32, #tpu.memory_space<vmem>>, vector<1x256xf32>
    %cst_18 = arith.constant dense<0.000000e+00> : vector<256xf32>
    %34 = vector.multi_reduction <add>, %31, %cst_18 [0] : vector<8x256xf32> to vector<256xf32>
    %35 = vector.shape_cast %34 : vector<256xf32> to vector<1x256xf32>
    %cst_19 = arith.constant 8.000000e+00 : f32
    %36 = vector.broadcast %cst_19 : f32 to vector<1x256xf32>
    %37 = arith.divf %35, %36 : vector<1x256xf32>
    %38 = vector.broadcast %37 : vector<1x256xf32> to vector<8x256xf32>
    %39 = arith.subf %31, %38 : vector<8x256xf32>
    %40 = arith.mulf %39, %39 : vector<8x256xf32>
    %cst_20 = arith.constant dense<0.000000e+00> : vector<256xf32>
    %41 = vector.multi_reduction <add>, %40, %cst_20 [0] : vector<8x256xf32> to vector<256xf32>
    %42 = vector.shape_cast %41 : vector<256xf32> to vector<1x256xf32>
    %cst_21 = arith.constant 8.000000e+00 : f32
    %43 = vector.broadcast %cst_21 : f32 to vector<1x256xf32>
    %44 = arith.divf %42, %43 : vector<1x256xf32>
    %cst_22 = arith.constant 9.99999974E-6 : f32
    %45 = vector.broadcast %cst_22 : f32 to vector<1x256xf32>
    %46 = arith.addf %44, %45 : vector<1x256xf32>
    %47 = math.rsqrt %46 : vector<1x256xf32>
    %48 = vector.broadcast %47 : vector<1x256xf32> to vector<8x256xf32>
    %49 = arith.mulf %39, %48 : vector<8x256xf32>
    %50 = vector.broadcast %32 : vector<1x256xf32> to vector<8x256xf32>
    %51 = arith.mulf %49, %50 : vector<8x256xf32>
    %52 = vector.broadcast %33 : vector<1x256xf32> to vector<8x256xf32>
    %53 = arith.addf %51, %52 : vector<8x256xf32>
    %cst_23 = arith.constant 0.000000e+00 : f32
    %54 = vector.broadcast %cst_23 : f32 to vector<8x256xf32>
    %55 = arith.maximumf %53, %54 : vector<8x256xf32>
    %c1_24 = arith.constant 1 : index
    %c0_25 = arith.constant 0 : index
    %c0_26 = arith.constant 0 : index
    %56 = vector.load %arg2[%c1_24, %c0_25, %c0_26] : memref<2x256x256xbf16, #tpu.memory_space<vmem>>, vector<1x256x256xbf16>
    %57 = vector.shape_cast %56 : vector<1x256x256xbf16> to vector<256x256xbf16>
    %58 = arith.truncf %55 : vector<8x256xf32> to vector<8x256xbf16>
    %cst_27 = arith.constant dense<0.000000e+00> : vector<8x256xf32>
    %59 = tpu.matmul %58, %57, %cst_27 {dimension_numbers = #tpu.dot_dimension_numbers<[1], [0], [0], [1], [0, 0, 1, 1], [], []>} : vector<8x256xbf16>, vector<256x256xbf16>, vector<8x256xf32> -> vector<8x256xf32>
    %c4 = arith.constant 4 : index
    %c0_28 = arith.constant 0 : index
    %60 = vector.load %arg4[%c4, %c0_28] : memref<8x256xf32, #tpu.memory_space<vmem>>, vector<1x256xf32>
    %c5 = arith.constant 5 : index
    %c0_29 = arith.constant 0 : index
    %61 = vector.load %arg4[%c5, %c0_29] : memref<8x256xf32, #tpu.memory_space<vmem>>, vector<1x256xf32>
    %cst_30 = arith.constant dense<0.000000e+00> : vector<256xf32>
    %62 = vector.multi_reduction <add>, %59, %cst_30 [0] : vector<8x256xf32> to vector<256xf32>
    %63 = vector.shape_cast %62 : vector<256xf32> to vector<1x256xf32>
    %cst_31 = arith.constant 8.000000e+00 : f32
    %64 = vector.broadcast %cst_31 : f32 to vector<1x256xf32>
    %65 = arith.divf %63, %64 : vector<1x256xf32>
    %66 = vector.broadcast %65 : vector<1x256xf32> to vector<8x256xf32>
    %67 = arith.subf %59, %66 : vector<8x256xf32>
    %68 = arith.mulf %67, %67 : vector<8x256xf32>
    %cst_32 = arith.constant dense<0.000000e+00> : vector<256xf32>
    %69 = vector.multi_reduction <add>, %68, %cst_32 [0] : vector<8x256xf32> to vector<256xf32>
    %70 = vector.shape_cast %69 : vector<256xf32> to vector<1x256xf32>
    %cst_33 = arith.constant 8.000000e+00 : f32
    %71 = vector.broadcast %cst_33 : f32 to vector<1x256xf32>
    %72 = arith.divf %70, %71 : vector<1x256xf32>
    %cst_34 = arith.constant 9.99999974E-6 : f32
    %73 = vector.broadcast %cst_34 : f32 to vector<1x256xf32>
    %74 = arith.addf %72, %73 : vector<1x256xf32>
    %75 = math.rsqrt %74 : vector<1x256xf32>
    %76 = vector.broadcast %75 : vector<1x256xf32> to vector<8x256xf32>
    %77 = arith.mulf %67, %76 : vector<8x256xf32>
    %78 = vector.broadcast %60 : vector<1x256xf32> to vector<8x256xf32>
    %79 = arith.mulf %77, %78 : vector<8x256xf32>
    %80 = vector.broadcast %61 : vector<1x256xf32> to vector<8x256xf32>
    %81 = arith.addf %79, %80 : vector<8x256xf32>
    %cst_35 = arith.constant 0.000000e+00 : f32
    %82 = vector.broadcast %cst_35 : f32 to vector<8x256xf32>
    %83 = arith.maximumf %81, %82 : vector<8x256xf32>
    %c6 = arith.constant 6 : index
    %c0_36 = arith.constant 0 : index
    %84 = vector.load %arg4[%c6, %c0_36] : memref<8x256xf32, #tpu.memory_space<vmem>>, vector<1x256xf32>
    %85 = vector.extract_strided_slice %84 {offsets = [0, 0], sizes = [1, 16], strides = [1, 1]} : vector<1x256xf32> to vector<1x16xf32>
    %c0_37 = arith.constant 0 : index
    %c0_38 = arith.constant 0 : index
    %86 = vector.load %arg3[%c0_37, %c0_38] : memref<256x16xbf16, #tpu.memory_space<vmem>>, vector<256x16xbf16>
    %87 = arith.truncf %83 : vector<8x256xf32> to vector<8x256xbf16>
    %cst_39 = arith.constant dense<0.000000e+00> : vector<8x16xf32>
    %88 = tpu.matmul %87, %86, %cst_39 {dimension_numbers = #tpu.dot_dimension_numbers<[1], [0], [0], [1], [0, 0, 1, 1], [], []>} : vector<8x256xbf16>, vector<256x16xbf16>, vector<8x16xf32> -> vector<8x16xf32>
    %89 = vector.broadcast %85 : vector<1x16xf32> to vector<8x16xf32>
    %90 = arith.addf %88, %89 : vector<8x16xf32>
    %c0_40 = arith.constant 0 : index
    %c0_41 = arith.constant 0 : index
    %91 = vector.load %arg5[%c0_40, %c0_41] : memref<8x16xf32, #tpu.memory_space<vmem>>, vector<8x16xf32>
    tpu.vector_store %arg5[%c0_40, %c0_41], %90 {strides = array<i32>} : memref<8x16xf32, #tpu.memory_space<vmem>>, vector<8x16xf32>,
    return
  }
}

</mosaic_0001>

<bundles_post_ra>
// kernel: batch_norm_simple_net.1
= control target key start
LH: loop header
LB: loop body
LE: loop exit
PB: predicated region body
PF: predicated region fallthrough
CT: control target
= control target key end

     0   :  { %10 = vsyncpa [#allocation3], 0  ;;  %s1417_s0 = inlined_call_operand.vmem [shape: f32[8,32], index: 0, kind: input, shape index: {}]   ;;  %s1418_s1 = inlined_call_operand.vmem [shape: bf16[32,256], index: 1, kind: input, shape index: {}]   ;;  %s1419_s2 = inlined_call_operand.hbm [shape: bf16[2,256,256], index: 2, kind: input, shape index: {}]   ;;  %s1420_s3 = inlined_call_operand.vmem [shape: bf16[256,16], index: 3, kind: input, shape index: {}]   ;;  %s1421_s4 = inlined_call_operand.vmem [shape: f32[8,256], index: 4, kind: input, shape index: {}]   ;;  %s1422_s5 = inlined_call_operand.hbm [shape: f32[8,16], index: 5, kind: output, shape index: {}]  }
   0x1   :  { %11 = vsyncpa [#allocation4], 0  ;;  %s1275_s18 = smov [#allocation2]  }
   0x2   :  { %s21_s19 = sshll.u32 %s1275_s18, 4  ;;  %s22_s19 = int_to_ptr.vmem [resolvable:$true] %s21_s19 }
   0x3   :  { %s1239_s20 = scalar_lea.vmem %s22_s19, 8192  ;;  %p1244_p1 = scmp.lt.s32.totalorder %s22_s19, %s22_s19 }
   0x4   :  { %p1240_p0 = scmp.ne.s32.totalorder %s22_s19, %s1239_s20  ;;  %p1245_p2 = scmp.lt.s32.totalorder %s1239_s20, %s1239_s20 }
   0x6   :  { %p1246_p3 = por %p1245_p2, %p1244_p1 }
   0x8   :  { %p1247_p4 = pnand %p1246_p3, %p1240_p0 }
   0xa   :  { %1250 = shalt.err (!%p1247_p4)
}
   0xb   :  { %s1276_s21 = smov 128   ;;  %s1277_s22 = smov 8  }
   0xc   :  { %27 = dma.hbm_to_vmem [thread:$0]  %s1419_s2, 8192, %s22_s19, [#allocation3], %s1276_s21, %s1276_s21, %s1277_s22  }
   0xd   :  { %1271 = dma.done.wait [#allocation3], 8192  }
   0xe   :  { %1272 = vsyncadd [#allocation3], 4294959104  ;;  %v1278_v0 = vmov 0   ;;  %v1101_v1 = vld [vmem:[%s1418_s1 + $0x14] ss:$8 sps:$4 sm:$0xff]   ;;  %v36_v5 = vld [vmem:[%s1417_s0] sm:$0xff] }
   0xf   :  { %98 = vmatprep.mubr.bf16.mxu0 %v1278_v0  ;;  %v1103_v2 = vld [vmem:[%s1418_s1 + $0x10] ss:$8 sps:$4 sm:$0xff]   ;;  %78 = vmatprep.subr.bf16.mxu0 %v1101_v1  ;;  %v1104_v3 = vld [vmem:[%s1418_s1 + $0x4] ss:$8 sps:$4 sm:$0xff]   ;;  %v1106_v4 = vld [vmem:[%s1418_s1] ss:$8 sps:$4 sm:$0xff]   ;;  %v41_v8 = vpack.c.bf16 %v36_v5, %v36_v5 }
  0x10   :  { %79 = vmatpush1.bf16.msra.mxu0 %v1103_v2  ;;  %v1107_v6 = vld [vmem:[#allocation2 + $0x74] ss:$8 sps:$4 sm:$0xff]   ;;  %v1109_v7 = vld [vmem:[#allocation2 + $0x70] ss:$8 sps:$4 sm:$0xff]   ;;  %vm62_vm0 = vcmask 261120   ;;  %s1279_s24 = smov [#allocation5]  }
  0x11   :  { %80 = vmatprep.subr.bf16.mxu0 %v1104_v3  ;;  %371 = vmatprep.subr.bf16.mxu1 %v1107_v6  ;;  %v1110_v9 = vld [vmem:[#allocation2 + $0x64] ss:$8 sps:$4 sm:$0xff]   ;;  %v1112_v10 = vld [vmem:[#allocation2 + $0x60] ss:$8 sps:$4 sm:$0xff]   ;;  %v1113_v11 = vld [vmem:[#allocation2 + $0x54] ss:$8 sps:$4 sm:$0xff]  }
  0x12   :  { %372 = vmatpush1.bf16.msra.mxu1 %v1109_v7  ;;  %v1115_v12 = vld [vmem:[#allocation2 + $0x50] ss:$8 sps:$4 sm:$0xff]   ;;  %v1116_v13 = vld [vmem:[#allocation2 + $0x44] ss:$8 sps:$4 sm:$0xff]   ;;  %v1118_v14 = vld [vmem:[#allocation2 + $0x40] ss:$8 sps:$4 sm:$0xff]  }
  0x13   :  { %373 = vmatprep.subr.bf16.mxu1 %v1110_v9  ;;  %v1119_v15 = vld [vmem:[#allocation2 + $0x34] ss:$8 sps:$4 sm:$0xff]   ;;  %v1121_v16 = vld [vmem:[#allocation2 + $0x30] ss:$8 sps:$4 sm:$0xff]   ;;  %v1122_v17 = vld [vmem:[#allocation2 + $0x24] ss:$8 sps:$4 sm:$0xff]  }
  0x14   :  { %81 = vmatpush1.bf16.msra.mxu0 %v1106_v4  ;;  %v1124_v18 = vld [vmem:[#allocation2 + $0x20] ss:$8 sps:$4 sm:$0xff]   ;;  %v1125_v19 = vld [vmem:[#allocation2 + $0x14] ss:$8 sps:$4 sm:$0xff]   ;;  %v1127_v20 = vld [vmem:[#allocation2 + $0x10] ss:$8 sps:$4 sm:$0xff]  }
  0x15   :  { %v1128_v21 = vld [vmem:[#allocation2 + $0x4] ss:$8 sps:$4 sm:$0xff]   ;;  %v1130_v22 = vld [vmem:[#allocation2] ss:$8 sps:$4 sm:$0xff]   ;;  %v1131_v23 = vld [vmem:[#allocation2 + $0xf4] ss:$8 sps:$4 sm:$0xff]  }
  0x16   :  { %374 = vmatpush1.bf16.msra.mxu1 %v1112_v10  ;;  %v1133_v24 = vld [vmem:[#allocation2 + $0xf0] ss:$8 sps:$4 sm:$0xff]   ;;  %v1134_v25 = vld [vmem:[#allocation2 + $0xe4] ss:$8 sps:$4 sm:$0xff]   ;;  %v1136_v26 = vld [vmem:[#allocation2 + $0xe0] ss:$8 sps:$4 sm:$0xff]  }
  0x17   :  { %987 = vmatmul.mubr.msk.bf16.vlgmr.msra.gmra.mxu0 %vm62_vm0, %v41_v8  ;;  %375 = vmatprep.subr.bf16.mxu1 %v1113_v11  ;;  %v1137_v27 = vld [vmem:[#allocation2 + $0xd4] ss:$8 sps:$4 sm:$0xff]   ;;  %v1139_v28 = vld [vmem:[#allocation2 + $0xd0] ss:$8 sps:$4 sm:$0xff]   ;;  %v1140_v29 = vld [vmem:[#allocation2 + $0xc4] ss:$8 sps:$4 sm:$0xff]  }
  0x18   :  { %v1142_v30 = vld [vmem:[#allocation2 + $0xc0] ss:$8 sps:$4 sm:$0xff]   ;;  %v1143_v31 = vld [vmem:[#allocation2 + $0xb4] ss:$8 sps:$4 sm:$0xff]   ;;  %v1145_v32 = vld [vmem:[#allocation2 + $0xb0] ss:$8 sps:$4 sm:$0xff]  }
  0x19   :  { %v1146_v33 = vld [vmem:[#allocation2 + $0xa4] ss:$8 sps:$4 sm:$0xff]   ;;  %v1148_v34 = vld [vmem:[#allocation2 + $0xa0] ss:$8 sps:$4 sm:$0xff]   ;;  %v1149_v35 = vld [vmem:[#allocation2 + $0x94] ss:$8 sps:$4 sm:$0xff]  }
  0x1a   :  { %376 = vmatpush1.bf16.msra.mxu1 %v1115_v12  ;;  %v1151_v36 = vld [vmem:[#allocation2 + $0x90] ss:$8 sps:$4 sm:$0xff]   ;;  %v1152_v37 = vld [vmem:[#allocation2 + $0x84] ss:$8 sps:$4 sm:$0xff]   ;;  %v1154_v38 = vld [vmem:[#allocation2 + $0x80] ss:$8 sps:$4 sm:$0xff]  }
  0x1b   :  { %377 = vmatprep.subr.bf16.mxu1 %v1116_v13  ;;  %v1155_v39 = vld [vmem:[#allocation2 + $0x170] ss:$8 sps:$4 sm:$0xff]   ;;  %v1157_v40 = vld [vmem:[#allocation2 + $0x174] ss:$8 sps:$4 sm:$0xff]   ;;  %s974_s25 = sshll.u32 %s1279_s24, 4  ;;  %vm966_vm1 = vcmask 130048   ;;  %s975_s25 = int_to_ptr.vmem [resolvable:$true] %s974_s25 }
  0x1c   :  { %677 = vmatprep.subr.bf16.mxu0 %v1157_v40  ;;  %v1161_v40 = vld [vmem:[#allocation2 + $0x150] ss:$8 sps:$4 sm:$0xff]   ;;  %s1251_s26 = scalar_lea.vmem %s975_s25, 128  ;;  %p1256_p6 = scmp.lt.s32.totalorder %s975_s25, %s975_s25 }
  0x1d   :  { %678 = vmatpush1.bf16.msra.mxu0 %v1155_v39  ;;  %v1163_v39 = vld [vmem:[#allocation2 + $0x154] ss:$8 sps:$4 sm:$0xff]   ;;  %p1252_p5 = scmp.ne.s32.totalorder %s975_s25, %s1251_s26  ;;  %p1257_p7 = scmp.lt.s32.totalorder %s1251_s26, %s1251_s26 }
  0x1e   :  { %378 = vmatpush1.bf16.msra.mxu1 %v1118_v14 }
  0x1f   :  { %379 = vmatprep.subr.bf16.mxu1 %v1119_v15  ;;  %v150_v15 = vlaneseq  ;;  %p1258_p8 = por %p1257_p7, %p1256_p6 }
  0x21   :  { %p1259_p9 = pnand %p1258_p8, %p1252_p5 }
  0x22   :  { %380 = vmatpush1.bf16.msra.mxu1 %v1121_v16  ;;  %v151_v16 = vshrl.u32 %v150_v15, 7 }
  0x23   :  { %381 = vmatprep.subr.bf16.mxu1 %v1122_v17 }
  0x24   :  { %v1328_v17 = vsub.s32 0, %v151_v16 }
  0x26   :  { %382 = vmatpush1.bf16.msra.mxu1 %v1124_v18  ;;  %v107_v18 = vld [vmem:[%s1421_s4] ss:$8 sm:$0x3] }
  0x27   :  { %383 = vmatprep.subr.bf16.mxu1 %v1125_v19  ;;  %v1333_v19 = vsub.s32 1, %v151_v16 }
  0x2a   :  { %384 = vmatpush1.bf16.msra.mxu1 %v1127_v20  ;;  %v988_v20 = vld [vmem:[%s1421_s4 + $0x1] ss:$8 sm:$0x3] }
  0x2b   :  { %385 = vmatprep.subr.bf16.mxu1 %v1128_v21  ;;  %v153_v21 = vrot.slane %v107_v18, %v1328_v17 }
  0x2e   :  { %386 = vmatpush1.bf16.msra.mxu1 %v1130_v22 }
  0x2f   :  { %387 = vmatprep.subr.bf16.mxu1 %v1131_v23 }
  0x32   :  { %388 = vmatpush2.bf16.msra.mxu1 %v1133_v24  ;;  %v157_v24 = vrot.slane %v107_v18, %v1333_v19 }
  0x33   :  { %389 = vmatprep.subr.bf16.mxu1 %v1134_v25  ;;  %v166_v25 = vrot.slane %v988_v20, %v1328_v17 }
  0x36   :  { %390 = vmatpush2.bf16.msra.mxu1 %v1136_v26 }
  0x37   :  { %391 = vmatprep.subr.bf16.mxu1 %v1137_v27 }
  0x3a   :  { %392 = vmatpush2.bf16.msra.mxu1 %v1139_v28  ;;  %v170_v28 = vrot.slane %v988_v20, %v1333_v19 }
  0x3b   :  { %393 = vmatprep.subr.bf16.mxu1 %v1140_v29 }
  0x3e   :  { %394 = vmatpush2.bf16.msra.mxu1 %v1142_v30 }
  0x3f   :  { %395 = vmatprep.subr.bf16.mxu1 %v1143_v31 }
  0x42   :  { %396 = vmatpush2.bf16.msra.mxu1 %v1145_v32 }
  0x43   :  { %397 = vmatprep.subr.bf16.mxu1 %v1146_v33 }
  0x46   :  { %398 = vmatpush2.bf16.msra.mxu1 %v1148_v34 }
  0x47   :  { %399 = vmatprep.subr.bf16.mxu1 %v1149_v35 }
  0x4a   :  { %400 = vmatpush2.bf16.msra.mxu1 %v1151_v36 }
  0x4b   :  { %401 = vmatprep.subr.bf16.mxu1 %v1152_v37  ;;  %v1160_v37 = vld [vmem:[#allocation2 + $0x164] ss:$8 sps:$4 sm:$0xff]  }
  0x4c   :  { %679 = vmatprep.subr.bf16.mxu0 %v1160_v37 }
  0x4e   :  { %402 = vmatpush2.bf16.msra.mxu1 %v1154_v38  ;;  %v1158_v38 = vld [vmem:[#allocation2 + $0x160] ss:$8 sps:$4 sm:$0xff]  }
  0x4f   :  { %680 = vmatpush1.bf16.msra.mxu0 %v1158_v38 }
  0x50   :  { %681 = vmatprep.subr.bf16.mxu0 %v1163_v39 }
  0x53   :  { %682 = vmatpush1.bf16.msra.mxu0 %v1161_v40 }
  0xd7   :  { %v100_v41 = vpop.f32.mrf.mxu0 }
  0xd8   :  { %v110_v42 = vrot.slane %v100_v41, 4 }
  0xd9   :  { %v102_v43 = vpop.f32.mrf.mxu0 }
  0xda   :  { %v111_v44 = vadd.f32 %v110_v42, %v100_v41  ;;  %v116_v45 = vrot.slane %v102_v43, 4  ;;  %v1164_v42 = vld [vmem:[#allocation2 + $0x140] ss:$8 sps:$4 sm:$0xff]  }
  0xdb   :  { %v104_v46 = vpop.f32.mrf.mxu0 }
  0xdc   :  { %v112_v47 = vrot.slane %v111_v44, 2  ;;  %v117_v48 = vadd.f32 %v116_v45, %v102_v43  ;;  %v1172_v45 = vld [vmem:[#allocation2 + $0x124] ss:$8 sps:$4 sm:$0xff]   ;;  %v1170_v46 = vld [vmem:[#allocation2 + $0x120] ss:$8 sps:$4 sm:$0xff]  }
  0xdd   :  { %v105_v49 = vpop.f32.mrf.mxu0 }
  0xde   :  { %v113_v50 = vadd.f32 %v112_v47, %v111_v44  ;;  %v118_v51 = vrot.slane %v117_v48, 2  ;;  %v1167_v44 = vld [vmem:[#allocation2 + $0x130] ss:$8 sps:$4 sm:$0xff]   ;;  %v1175_v47 = vld [vmem:[#allocation2 + $0x114] ss:$8 sps:$4 sm:$0xff]  }
  0xdf   :  { %v1178_v49 = vld [vmem:[#allocation2 + $0x104] ss:$8 sps:$4 sm:$0xff]  }
  0xe0   :  { %v114_v52 = vrot.slane %v113_v50, 1  ;;  %v119_v53 = vadd.f32 %v118_v51, %v117_v48  ;;  %v1173_v48 = vld [vmem:[#allocation2 + $0x110] ss:$8 sps:$4 sm:$0xff]   ;;  %v1181_v51 = vld [vmem:[#allocation2 + $0x1f4] ss:$8 sps:$4 sm:$0xff]  }
  0xe2   :  { %v115_v54 = vadd.f32 %v114_v52, %v113_v50  ;;  %v120_v55 = vrot.slane %v119_v53, 1  ;;  %v1176_v50 = vld [vmem:[#allocation2 + $0x100] ss:$8 sps:$4 sm:$0xff]   ;;  %v1179_v52 = vld [vmem:[#allocation2 + $0x1f0] ss:$8 sps:$4 sm:$0xff]  }
  0xe4   :  { %v123_v56 = vmul.f32 0.125, %v115_v54  ;;  %v121_v57 = vadd.f32 %v120_v55, %v119_v53  ;;  %v1184_v53 = vld [vmem:[#allocation2 + $0x1e4] ss:$8 sps:$4 sm:$0xff]   ;;  %v1182_v54 = vld [vmem:[#allocation2 + $0x1e0] ss:$8 sps:$4 sm:$0xff]  }
  0xe5   :  { %v1187_v55 = vld [vmem:[#allocation2 + $0x1d4] ss:$8 sps:$4 sm:$0xff]  }
  0xe6   :  { %v125_v58 = vsub.f32 %v100_v41, %v123_v56  ;;  %v124_v59 = vmul.f32 0.125, %v121_v57  ;;  %v1166_v41 = vld [vmem:[#allocation2 + $0x144] ss:$8 sps:$4 sm:$0xff]   ;;  %v1185_v56 = vld [vmem:[#allocation2 + $0x1d0] ss:$8 sps:$4 sm:$0xff]  }
  0xe7   :  { %683 = vmatprep.subr.bf16.mxu0 %v1166_v41  ;;  %v1190_v57 = vld [vmem:[#allocation2 + $0x1c4] ss:$8 sps:$4 sm:$0xff]  }
  0xe8   :  { %v127_v60 = vmul.f32 %v125_v58, %v125_v58  ;;  %v126_v61 = vsub.f32 %v102_v43, %v124_v59  ;;  %684 = vmatpush1.bf16.msra.mxu0 %v1164_v42  ;;  %v1169_v43 = vld [vmem:[#allocation2 + $0x134] ss:$8 sps:$4 sm:$0xff]  }
  0xe9   :  { %685 = vmatprep.subr.bf16.mxu0 %v1169_v43  ;;  %v1193_v59 = vld [vmem:[#allocation2 + $0x1b4] ss:$8 sps:$4 sm:$0xff]   ;;  %v1021_v43 = vld [vmem:[%s1421_s4 + $0x2] ss:$8 sm:$0x3] }
  0xea   :  { %v129_v62 = vrot.slane %v127_v60, 4  ;;  %v128_v63 = vmul.f32 %v126_v61, %v126_v61 }
  0xec   :  { %v130_v0 = vadd.f32 %v129_v62, %v127_v60  ;;  %v135_v1 = vrot.slane %v128_v63, 4  ;;  %686 = vmatpush1.bf16.msra.mxu0 %v1167_v44  ;;  %v1191_v60 = vld [vmem:[#allocation2 + $0x1b0] ss:$8 sps:$4 sm:$0xff]   ;;  %v1194_v62 = vld [vmem:[#allocation2 + $0x1a0] ss:$8 sps:$4 sm:$0xff]  }
  0xed   :  { %687 = vmatprep.subr.bf16.mxu0 %v1172_v45  ;;  %v1022_v44 = vld [vmem:[%s1421_s4 + $0x3] ss:$8 sm:$0x3]  ;;  %v458_v45 = vrot.slane %v1021_v43, %v1328_v17 }
  0xee   :  { %v131_v2 = vrot.slane %v130_v0, 2  ;;  %v136_v3 = vadd.f32 %v135_v1, %v128_v63  ;;  %v1197_v63 = vld [vmem:[#allocation2 + $0x190] ss:$8 sps:$4 sm:$0xff]   ;;  %v1202_v1 = vld [vmem:[#allocation2 + $0x184] ss:$8 sps:$4 sm:$0xff]  }
  0xf0   :  { %v132_v4 = vadd.f32 %v131_v2, %v130_v0  ;;  %v137_v5 = vrot.slane %v136_v3, 2  ;;  %688 = vmatpush1.bf16.msra.mxu0 %v1170_v46  ;;  %v1199_v0 = vld [vmem:[#allocation2 + $0x194] ss:$8 sps:$4 sm:$0xff]   ;;  %v1200_v2 = vld [vmem:[#allocation2 + $0x180] ss:$8 sps:$4 sm:$0xff]  }
  0xf1   :  { %689 = vmatprep.subr.bf16.mxu0 %v1175_v47 }
  0xf2   :  { %v133_v6 = vrot.slane %v132_v4, 1  ;;  %v138_v7 = vadd.f32 %v137_v5, %v136_v3 }
  0xf4   :  { %v134_v8 = vadd.f32 %v133_v6, %v132_v4  ;;  %v139_v9 = vrot.slane %v138_v7, 1  ;;  %690 = vmatpush1.bf16.msra.mxu0 %v1173_v48  ;;  %v462_v48 = vrot.slane %v1021_v43, %v1333_v19 }
  0xf5   :  { %691 = vmatprep.subr.bf16.mxu0 %v1178_v49  ;;  %v471_v49 = vrot.slane %v1022_v44, %v1328_v17 }
  0xf6   :  { %v141_v10 = vmul.f32 0.125, %v134_v8  ;;  %v140_v11 = vadd.f32 %v139_v9, %v138_v7 }
  0xf8   :  { %v143_v12 = vadd.f32 1e-05, %v141_v10  ;;  %v142_v13 = vmul.f32 0.125, %v140_v11  ;;  %692 = vmatpush1.bf16.msra.mxu0 %v1176_v50 }
  0xf9   :  { %693 = vmatprep.subr.bf16.mxu0 %v1181_v51 }
  0xfa   :  { %1219 = vrsqrt.f32 %v143_v12  ;;  %v144_v14 = vadd.f32 1e-05, %v142_v13 }
  0xfc   :  { %1221 = vrsqrt.f32 %v144_v14  ;;  %694 = vmatpush2.bf16.msra.mxu0 %v1179_v52 }
  0xfd   :  { %695 = vmatprep.subr.bf16.mxu0 %v1184_v53  ;;  %v475_v53 = vrot.slane %v1022_v44, %v1333_v19 }
 0x100   :  { %696 = vmatpush2.bf16.msra.mxu0 %v1182_v54 }
 0x101   :  { %697 = vmatprep.subr.bf16.mxu0 %v1187_v55 }
 0x104   :  { %698 = vmatpush2.bf16.msra.mxu0 %v1185_v56 }
 0x105   :  { %699 = vmatprep.subr.bf16.mxu0 %v1190_v57 }
 0x107   :  { %v1220_v22 = vpop.eup %1219 }
 0x108   :  { %v147_v23 = vmul.f32 %v1220_v22, %v125_v58  ;;  %v1188_v58 = vld [vmem:[#allocation2 + $0x1c0] ss:$8 sps:$4 sm:$0xff]  }
 0x109   :  { %v1222_v26 = vpop.eup %1221  ;;  %700 = vmatpush2.bf16.msra.mxu0 %v1188_v58 }
 0x10a   :  { %v148_v27 = vmul.f32 %v1222_v26, %v126_v61  ;;  %v160_v29 = vmul.f32 %v153_v21, %v147_v23  ;;  %701 = vmatprep.subr.bf16.mxu0 %v1193_v59  ;;  %v1196_v61 = vld [vmem:[#allocation2 + $0x1a4] ss:$8 sps:$4 sm:$0xff]  }
 0x10c   :  { %v161_v30 = vmul.f32 %v157_v24, %v148_v27  ;;  %v173_v31 = vadd.f32 %v166_v25, %v160_v29 }
 0x10d   :  { %702 = vmatpush2.bf16.msra.mxu0 %v1191_v60 }
 0x10e   :  { %v174_v32 = vadd.f32 %v170_v28, %v161_v30  ;;  %v175_v33 = vmax.f32 %v173_v31, 0.0  ;;  %703 = vmatprep.subr.bf16.mxu0 %v1196_v61  ;;  %v1203_v61 = vld [vmem:[%s1420_s3 + $0x78] sm:$0xff]  }
 0x10f   :  { %1074 = vmatprep.subr.bf16.mxu1 %v1203_v61 }
 0x110   :  { %v176_v34 = vmax.f32 %v174_v32, 0.0  ;;  %v209_v36 = vpack.c.bf16 %v175_v33, %v175_v33 }
 0x111   :  { %704 = vmatpush2.bf16.msra.mxu0 %v1194_v62  ;;  %v1204_v62 = vld [vmem:[%s1420_s3 + $0x38] sm:$0xff]  }
 0x112   :  { %v210_v35 = vpack.c.bf16 %v176_v34, %v176_v34  ;;  %705 = vmatprep.subr.bf16.mxu0 %v1199_v0  ;;  %v1206_v0 = vld [vmem:[%s1420_s3 + $0x30] sm:$0xff]  }
 0x114   :  { %403 = vmatprep.mubr.bf16.mxu1 %v210_v35 }
 0x115   :  { %404 = vmatmul.mubr.bf16.vlgmr.msra.gmra.mxu1 %v209_v36  ;;  %706 = vmatpush2.bf16.msra.mxu0 %v1197_v63  ;;  %v1205_v63 = vld [vmem:[%s1420_s3 + $0x70] sm:$0xff]  }
 0x116   :  { %707 = vmatprep.subr.bf16.mxu0 %v1202_v1  ;;  %1075 = vmatpush3.bf16.msra.mxu1 %v1204_v62  ;;  %v1207_v1 = vld [vmem:[%s1420_s3 + $0x68] sm:$0xff]  }
 0x117   :  { %1076 = vmatprep.subr.bf16.mxu1 %v1205_v63 }
 0x119   :  { %708 = vmatpush2.bf16.msra.mxu0 %v1200_v2  ;;  %v1208_v2 = vld [vmem:[%s1420_s3 + $0x28] sm:$0xff]  }
 0x11a   :  { %1077 = vmatpush3.bf16.msra.mxu1 %v1206_v0 }
 0x11b   :  { %1078 = vmatprep.subr.bf16.mxu1 %v1207_v1 }
 0x11e   :  { %1079 = vmatpush3.bf16.msra.mxu1 %v1208_v2 }
 0x1d5   :  { %v405_v3 = vpop.f32.mrf.mxu1 }
 0x1d6   :  { %v416_v4 = vrot.slane %v405_v3, 4 }
 0x1d7   :  { %v407_v5 = vpop.f32.mrf.mxu1 }
 0x1d8   :  { %v417_v6 = vadd.f32 %v416_v4, %v405_v3  ;;  %v422_v7 = vrot.slane %v407_v5, 4  ;;  %v1210_v4 = vld [vmem:[%s1420_s3 + $0x20] sm:$0xff]  }
 0x1d9   :  { %v409_v8 = vpop.f32.mrf.mxu1 }
 0x1da   :  { %v418_v9 = vrot.slane %v417_v6, 2  ;;  %v423_v10 = vadd.f32 %v422_v7, %v407_v5  ;;  %v1213_v7 = vld [vmem:[%s1420_s3 + $0x50] sm:$0xff]  }
 0x1db   :  { %v410_v11 = vpop.f32.mrf.mxu1  ;;  %v1214_v8 = vld [vmem:[%s1420_s3 + $0x10] sm:$0xff]  }
 0x1dc   :  { %v419_v12 = vadd.f32 %v418_v9, %v417_v6  ;;  %v424_v13 = vrot.slane %v423_v10, 2  ;;  %v1212_v6 = vld [vmem:[%s1420_s3 + $0x18] sm:$0xff]   ;;  %v1215_v9 = vld [vmem:[%s1420_s3 + $0x48] sm:$0xff]   ;;  %v1217_v11 = vld [vmem:[%s1420_s3 + $0x40] sm:$0xff]  }
 0x1de   :  { %v420_v14 = vrot.slane %v419_v12, 1  ;;  %v425_v15 = vadd.f32 %v424_v13, %v423_v10  ;;  %v1216_v10 = vld [vmem:[%s1420_s3 + $0x8] sm:$0xff]  }
 0x1e0   :  { %v421_v16 = vadd.f32 %v420_v14, %v419_v12  ;;  %v426_v18 = vrot.slane %v425_v15, 1  ;;  %v1218_v12 = vld [vmem:[%s1420_s3] sm:$0xff]  }
 0x1e2   :  { %v428_v20 = vmul.f32 0.125, %v421_v16  ;;  %v427_v21 = vadd.f32 %v426_v18, %v425_v15 }
 0x1e4   :  { %v430_v22 = vsub.f32 %v405_v3, %v428_v20  ;;  %v429_v23 = vmul.f32 0.125, %v427_v21  ;;  %v1209_v3 = vld [vmem:[%s1420_s3 + $0x60] sm:$0xff]  }
 0x1e5   :  { %1080 = vmatprep.subr.bf16.mxu1 %v1209_v3 }
 0x1e6   :  { %v432_v24 = vmul.f32 %v430_v22, %v430_v22  ;;  %v431_v25 = vsub.f32 %v407_v5, %v429_v23  ;;  %1081 = vmatpush3.bf16.msra.mxu1 %v1210_v4  ;;  %v1211_v5 = vld [vmem:[%s1420_s3 + $0x58] sm:$0xff]  }
 0x1e7   :  { %1082 = vmatprep.subr.bf16.mxu1 %v1211_v5 }
 0x1e8   :  { %v434_v26 = vrot.slane %v432_v24, 4  ;;  %v433_v27 = vmul.f32 %v431_v25, %v431_v25 }
 0x1ea   :  { %v435_v28 = vadd.f32 %v434_v26, %v432_v24  ;;  %v440_v29 = vrot.slane %v433_v27, 4  ;;  %1083 = vmatpush3.bf16.msra.mxu1 %v1212_v6 }
 0x1eb   :  { %1084 = vmatprep.subr.bf16.mxu1 %v1213_v7  ;;  %v1057_v7 = vld [vmem:[%s1421_s4 + $0x6] ss:$8 sm:$0x3] }
 0x1ec   :  { %v436_v30 = vrot.slane %v435_v28, 2  ;;  %v441_v31 = vadd.f32 %v440_v29, %v433_v27 }
 0x1ee   :  { %v437_v32 = vadd.f32 %v436_v30, %v435_v28  ;;  %v442_v33 = vrot.slane %v441_v31, 2  ;;  %1085 = vmatpush3.bf16.msra.mxu1 %v1214_v8 }
 0x1ef   :  { %1086 = vmatprep.subr.bf16.mxu1 %v1215_v9  ;;  %v828_v9 = vrot.slane %v1057_v7, %v1328_v17 }
 0x1f0   :  { %v438_v34 = vrot.slane %v437_v32, 1  ;;  %v443_v35 = vadd.f32 %v442_v33, %v441_v31 }
 0x1f2   :  { %v439_v36 = vadd.f32 %v438_v34, %v437_v32  ;;  %v444_v37 = vrot.slane %v443_v35, 1  ;;  %1087 = vmatpush3.bf16.msra.mxu1 %v1216_v10 }
 0x1f3   :  { %1088 = vmatprep.subr.bf16.mxu1 %v1217_v11 }
 0x1f4   :  { %v446_v38 = vmul.f32 0.125, %v439_v36  ;;  %v445_v39 = vadd.f32 %v444_v37, %v443_v35 }
 0x1f6   :  { %v448_v40 = vadd.f32 1e-05, %v446_v38  ;;  %v447_v41 = vmul.f32 0.125, %v445_v39  ;;  %1089 = vmatpush3.bf16.msra.mxu1 %v1218_v12 }
 0x1f8   :  { %1223 = vrsqrt.f32 %v448_v40  ;;  %v449_v42 = vadd.f32 1e-05, %v447_v41 }
 0x1fa   :  { %1225 = vrsqrt.f32 %v449_v42 }
 0x205   :  { %v1224_v46 = vpop.eup %1223 }
 0x206   :  { %v452_v47 = vmul.f32 %v1224_v46, %v430_v22 }
 0x207   :  { %v1226_v50 = vpop.eup %1225 }
 0x208   :  { %v465_v51 = vmul.f32 %v458_v45, %v452_v47  ;;  %v453_v52 = vmul.f32 %v1226_v50, %v431_v25 }
 0x20a   :  { %v466_v54 = vmul.f32 %v462_v48, %v453_v52  ;;  %v478_v55 = vadd.f32 %v471_v49, %v465_v51 }
 0x20c   :  { %v479_v56 = vadd.f32 %v475_v53, %v466_v54  ;;  %v480_v57 = vmax.f32 %v478_v55, 0.0  ;;  %v1055_v53 = vld [vmem:[%s1421_s4 + $0x4] ss:$8 sm:$0x3] }
 0x20d   :  { %v1056_v54 = vld [vmem:[%s1421_s4 + $0x5] ss:$8 sm:$0x3]  ;;  %v764_v55 = vrot.slane %v1055_v53, %v1328_v17 }
 0x20e   :  { %v481_v58 = vmax.f32 %v479_v56, 0.0  ;;  %v515_v60 = vpack.c.bf16 %v480_v57, %v480_v57  ;;  %v781_v63 = vrot.slane %v1056_v54, %v1333_v19 }
 0x210   :  { %v516_v59 = vpack.c.bf16 %v481_v58, %v481_v58  ;;  %v768_v58 = vrot.slane %v1055_v53, %v1333_v19 }
 0x212   :  { %709 = vmatprep.mubr.bf16.mxu0 %v516_v59  ;;  %v777_v59 = vrot.slane %v1056_v54, %v1328_v17 }
 0x213   :  { %710 = vmatmul.mubr.bf16.vlgmr.msra.gmra.mxu0 %v515_v60 }
 0x2d3   :  { %v711_v13 = vpop.f32.mrf.mxu0 }
 0x2d4   :  { %v722_v14 = vrot.slane %v711_v13, 4 }
 0x2d5   :  { %v713_v15 = vpop.f32.mrf.mxu0 }
 0x2d6   :  { %v723_v16 = vadd.f32 %v722_v14, %v711_v13  ;;  %v728_v18 = vrot.slane %v713_v15, 4 }
 0x2d7   :  { %v715_v20 = vpop.f32.mrf.mxu0 }
 0x2d8   :  { %v724_v21 = vrot.slane %v723_v16, 2  ;;  %v729_v22 = vadd.f32 %v728_v18, %v713_v15 }
 0x2d9   :  { %v716_v23 = vpop.f32.mrf.mxu0 }
 0x2da   :  { %v725_v24 = vadd.f32 %v724_v21, %v723_v16  ;;  %v730_v25 = vrot.slane %v729_v22, 2 }
 0x2dc   :  { %v726_v26 = vrot.slane %v725_v24, 1  ;;  %v731_v27 = vadd.f32 %v730_v25, %v729_v22 }
 0x2de   :  { %v727_v28 = vadd.f32 %v726_v26, %v725_v24  ;;  %v732_v29 = vrot.slane %v731_v27, 1 }
 0x2e0   :  { %v734_v30 = vmul.f32 0.125, %v727_v28  ;;  %v733_v31 = vadd.f32 %v732_v29, %v731_v27 }
 0x2e2   :  { %v736_v32 = vsub.f32 %v711_v13, %v734_v30  ;;  %v735_v33 = vmul.f32 0.125, %v733_v31 }
 0x2e4   :  { %v738_v34 = vmul.f32 %v736_v32, %v736_v32  ;;  %v737_v35 = vsub.f32 %v713_v15, %v735_v33 }
 0x2e6   :  { %v740_v36 = vrot.slane %v738_v34, 4  ;;  %v739_v37 = vmul.f32 %v737_v35, %v737_v35 }
 0x2e8   :  { %v741_v38 = vadd.f32 %v740_v36, %v738_v34  ;;  %v746_v39 = vrot.slane %v739_v37, 4 }
 0x2ea   :  { %v742_v40 = vrot.slane %v741_v38, 2  ;;  %v747_v41 = vadd.f32 %v746_v39, %v739_v37 }
 0x2ec   :  { %v743_v42 = vadd.f32 %v742_v40, %v741_v38  ;;  %v748_v43 = vrot.slane %v747_v41, 2 }
 0x2ee   :  { %v744_v44 = vrot.slane %v743_v42, 1  ;;  %v749_v45 = vadd.f32 %v748_v43, %v747_v41 }
 0x2f0   :  { %v745_v46 = vadd.f32 %v744_v44, %v743_v42  ;;  %v750_v47 = vrot.slane %v749_v45, 1 }
 0x2f2   :  { %v752_v48 = vmul.f32 0.125, %v745_v46  ;;  %v751_v49 = vadd.f32 %v750_v47, %v749_v45 }
 0x2f4   :  { %v754_v50 = vadd.f32 1e-05, %v752_v48  ;;  %v753_v51 = vmul.f32 0.125, %v751_v49 }
 0x2f6   :  { %1227 = vrsqrt.f32 %v754_v50  ;;  %v755_v52 = vadd.f32 1e-05, %v753_v51 }
 0x2f8   :  { %1229 = vrsqrt.f32 %v755_v52 }
 0x303   :  { %v1228_v56 = vpop.eup %1227 }
 0x304   :  { %v758_v57 = vmul.f32 %v1228_v56, %v736_v32 }
 0x305   :  { %v1230_v60 = vpop.eup %1229 }
 0x306   :  { %v771_v61 = vmul.f32 %v764_v55, %v758_v57  ;;  %v759_v62 = vmul.f32 %v1230_v60, %v737_v35 }
 0x308   :  { %v772_v0 = vmul.f32 %v768_v58, %v759_v62  ;;  %v784_v1 = vadd.f32 %v777_v59, %v771_v61 }
 0x30a   :  { %v785_v2 = vadd.f32 %v781_v63, %v772_v0  ;;  %v786_v3 = vmax.f32 %v784_v1, 0.0 }
 0x30c   :  { %v787_v4 = vmax.f32 %v785_v2, 0.0  ;;  %v822_v6 = vpack.c.bf16 %v786_v3, %v786_v3 }
 0x30e   :  { %v823_v5 = vpack.c.bf16 %v787_v4, %v787_v4 }
 0x310   :  { %958 = vmatprep.mubr.bf16.mxu1 %v823_v5 }
 0x311   :  { %959 = vmatmul.mubr.bf16.vlgmr.msra.gmra.mxu1 %v822_v6 }
 0x3d1   :  { %v1090_v8 = vpop.f32.mrf.mxu1 }
 0x3d3   :  { %v1091_v10 = vpop.f32.mrf.mxu1 }
 0x3d4   :  { %v1092_v19 = vadd.f32 %v1091_v10, %v1090_v8 }
 0x3d5   :  { %v1093_v11 = vpop.f32.mrf.mxu1 }
 0x3d6   :  { %v961_v12 = vadd.f32 %v1092_v19, %v828_v9 }
 0x3d7   :  { %v1094_v13 = vpop.f32.mrf.mxu1 }
 0x3d8   :  { %967 = vst.msk [vmem:[#allocation5] sm:$0xff] %vm966_vm1, %v961_v12 }
 0x3d9   :  { %1262 = shalt.err (!%p1259_p9)
}
 0x3da   :  { %977 = dma.vmem_to_hbm [thread:$0]  %s975_s25, 128, %s1422_s5, [#allocation4]  }
 0x3db   :  { %1273 = dma.done.wait [#allocation4], 128  }
 0x3dc   :  { %1274 = vsyncadd [#allocation4], 4294967168 }
 0x3dd   :  { %981 = vsyncpa [#allocation3], 1 }
 0x3de   :  { %982 = vsyncpa [#allocation4], 1 }

</bundles_post_ra>
